<compile_context>
chip_gen: v7x
topology: tpu7x:2x2x1
jax: 0.10.0
libtpu: 0.0.40
codegen_flags: <defaults>
</compile_context>

<pallas_src>
import functools

import jax
import jax.numpy as jnp
from jax.experimental import pallas as pl
from jax.experimental.pallas import tpu as pltpu

_LANE = 128
_NEG_BIG = -1e30  # pad-class bias sentinel (f32 accumulator/logits only)


def _round_up(x, m):
    return ((x + m - 1) // m) * m


def _cdiv(a, b):
    return (a + b - 1) // b


def _vmem_budget_bytes():
    """Per-generation scoped-VMEM budget (leaves headroom for internal scratch)."""
    try:
        cap = int(pltpu.get_tpu_info().vmem_capacity_bytes)
    except Exception:
        cap = 64 << 20  # conservative default (v7x per-TensorCore VMEM)
    return int(min(3 * cap // 4, 96 << 20))


def _lane_dense_argmax(logits):
    """Argmax over the class (lane) axis; ties -> lowest index (== jnp.argmax)."""
    cpad = logits.shape[-1]
    max_val = jnp.max(logits, axis=-1, keepdims=True)
    idx = jax.lax.broadcasted_iota(jnp.int32, logits.shape, 1)
    masked = jnp.where(logits == max_val, idx, jnp.int32(cpad))
    return jnp.min(masked, axis=-1, keepdims=True)          # [tm, 1] int32


def _kernel_w_resident(x_ref, w_ref, b_ref, *out_refs, return_logits):
    """Grid = (B tiles,).  Full-D matmul per tile; W block is constant-index
    (fetched from HBM exactly once for the whole grid)."""
    x = x_ref[...]
    if x.dtype != jnp.bfloat16:
        x = x.astype(jnp.bfloat16)            # cast rides free VPU slots
    logits = jnp.dot(x, w_ref[...], preferred_element_type=jnp.float32) + b_ref[...]
    if return_logits:
        logits_ref, pred_ref = out_refs
        logits_ref[...] = logits
    else:
        (pred_ref,) = out_refs
    pred = _lane_dense_argmax(logits)
    # Lane-dense store: class index broadcast across all 128 lanes.
    pred_ref[...] = jnp.broadcast_to(pred, pred_ref.shape)


def _kernel_k_tiled(x_ref, w_ref, b_ref, *refs, return_logits):
    """Grid = (B tiles, K tiles).  Accumulates directly into the resident
    logits output block (or a VMEM scratch in the preds-only path)."""
    if return_logits:
        logits_ref, pred_ref = refs
        acc_ref = logits_ref                  # logits block doubles as the acc
    else:
        pred_ref, acc_ref = refs              # acc_ref is VMEM scratch

    k = pl.program_id(1)

    @pl.when(k == 0)
    def _():
        acc_ref[...] = jnp.zeros_like(acc_ref)

    x = x_ref[...]
    if x.dtype != jnp.bfloat16:
        x = x.astype(jnp.bfloat16)
    acc_ref[...] += jnp.dot(x, w_ref[...], preferred_element_type=jnp.float32)

    @pl.when(k == pl.num_programs(1) - 1)
    def _():
        logits = acc_ref[...] + b_ref[...]
        if return_logits:
            logits_ref[...] = logits
        pred = _lane_dense_argmax(logits)
        pred_ref[...] = jnp.broadcast_to(pred, pred_ref.shape)


def prepare_params(w, b):
    """Pad + cast the classifier head once (hoisted out of the per-call path).

    w: [D, C] float, b: [C] or [1, C] float.
    Returns (wb [Dp, Cp] bf16, bb [1, Cp] f32) with Dp/Cp lane-aligned and
    padded classes carrying a -1e30 bias so argmax never selects them.
    """
    D, C = w.shape
    Dp, Cp = _round_up(D, _LANE), _round_up(C, _LANE)
    wb = jnp.zeros((Dp, Cp), jnp.bfloat16).at[:D, :C].set(w.astype(jnp.bfloat16))
    bb = jnp.full((1, Cp), _NEG_BIG, jnp.float32).at[:, :C].set(
        jnp.reshape(b, (1, C)).astype(jnp.float32))
    return wb, bb


@functools.partial(jax.jit, static_argnames=("nclasses", "return_logits"))
def autoclassify_apply(x, wb, bb, *, nclasses, return_logits=True):
    """Linear head + argmax via Pallas on pre-padded params.

    x:  [B, D] features (any float dtype).
    wb: [Dp, Cp] bf16 padded weight, bb: [1, Cp] f32 padded bias.
    Returns (logits [B, C] f32, preds [B] i32) if return_logits else preds [B].
    """
    B, D = x.shape
    Dp, Cp = wb.shape
    C = nclasses

    budget = _vmem_budget_bytes()
    w_bytes = Dp * Cp * 2                       # bf16 resident weight
    w_resident = 2 * w_bytes <= budget // 2     # count 2x (buffering), keep slack

    need_pad_d = (D != Dp)
    xbytes = 2 if need_pad_d else x.dtype.itemsize

    if w_resident:
        tk = Dp
    else:
        tk = 128
        for cand in (512, 256, 128):
            if Dp % cand == 0:
                tk = cand
                break

    def fits_resident(tm):
        per = (2 * tm * Dp * xbytes             # x (double buffered)
               + 2 * w_bytes                    # resident W (conservatively 2x)
               + 2 * Cp * 4                     # bias
               + 2 * tm * Cp * 4                # logits out / spill headroom
               + 2 * tm * _LANE * 4)            # preds out
        return per <= budget

    def fits_ktiled(tm):
        per = (2 * tm * tk * xbytes
               + 2 * tk * Cp * 2
               + 2 * Cp * 4
               + (2 if return_logits else 1) * tm * Cp * 4
               + tm * Cp * 4                    # epilogue / spill headroom
               + 2 * tm * _LANE * 4)
        return per <= budget

    fits = fits_resident if w_resident else fits_ktiled
    tm_hi = max(16, _round_up(B, 16))
    tm = 16
    for cand in (1024, 512, 256, 128, 64, 32, 16):
        if cand <= tm_hi and fits(cand):
            tm = cand
            break
    if B >= 32:
        # Keep >= 2 batch tiles so the "parallel" axis can feed both
        # TensorCores on v7x (and megacore on v5e/v6e).
        tm = min(tm, max(16, _round_up(_cdiv(B, 2), 16)))

    Bp = _round_up(B, tm)
    n_bt = Bp // tm

    # Stage x: only materialize a padded bf16 copy when the geometry forces it;
    # otherwise feed the original array and cast to bf16 inside the kernel.
    if need_pad_d or Bp != B:
        xq = jnp.zeros((Bp, Dp), jnp.bfloat16).at[:B, :D].set(x.astype(jnp.bfloat16))
    else:
        xq = x

    preds_sds = jax.ShapeDtypeStruct((Bp, _LANE), jnp.int32)

    if w_resident:
        grid = (n_bt,)
        in_specs = [
            pl.BlockSpec((tm, Dp), lambda i: (i, 0)),        # x tile
            pl.BlockSpec((Dp, Cp), lambda i: (0, 0)),        # W: fetched once
            pl.BlockSpec((1, Cp), lambda i: (0, 0)),         # bias
        ]
        kernel = functools.partial(_kernel_w_resident, return_logits=return_logits)
        scratch = []
        preds_spec = pl.BlockSpec((tm, _LANE), lambda i: (i, 0))
        if return_logits:
            out_shape = (jax.ShapeDtypeStruct((Bp, Cp), jnp.float32), preds_sds)
            out_specs = (pl.BlockSpec((tm, Cp), lambda i: (i, 0)), preds_spec)
        else:
            out_shape = preds_sds
            out_specs = preds_spec
        dims = ("parallel",)
        w_reads = 1
    else:
        # TODO(synk): add class-axis (N) tiling with a running (max, idx) merge
        # for extremely wide heads so the (tk, Cp) weight tile cannot exceed
        # v7x's 64 MiB VMEM.
        n_kt = Dp // tk
        grid = (n_bt, n_kt)
        in_specs = [
            pl.BlockSpec((tm, tk), lambda i, k: (i, k)),     # x tile
            pl.BlockSpec((tk, Cp), lambda i, k: (k, 0)),     # W streamed over K
            pl.BlockSpec((1, Cp), lambda i, k: (0, 0)),      # bias
        ]
        kernel = functools.partial(_kernel_k_tiled, return_logits=return_logits)
        preds_spec = pl.BlockSpec((tm, _LANE), lambda i, k: (i, 0))
        if return_logits:
            out_shape = (jax.ShapeDtypeStruct((Bp, Cp), jnp.float32), preds_sds)
            out_specs = (pl.BlockSpec((tm, Cp), lambda i, k: (i, 0)), preds_spec)
            scratch = []                                     # acc == logits block
        else:
            out_shape = preds_sds
            out_specs = preds_spec
            scratch = [pltpu.VMEM((tm, Cp), jnp.float32)]
        dims = ("parallel", "arbitrary")
        w_reads = n_bt                                       # W re-read per B tile

    bytes_accessed = (Bp * Dp * xbytes
                      + w_reads * Dp * Cp * 2
                      + Cp * 4
                      + (Bp * Cp * 4 if return_logits else 0)
                      + Bp * _LANE * 4)
    cost = pl.CostEstimate(flops=2 * Bp * Dp * Cp, transcendentals=0,
                           bytes_accessed=int(bytes_accessed))

    result = pl.pallas_call(
        kernel,
        out_shape=out_shape,
        grid_spec=pltpu.PrefetchScalarGridSpec(
            num_scalar_prefetch=0,
            grid=grid,
            in_specs=in_specs,
            out_specs=out_specs,
            scratch_shapes=scratch,
        ),
        compiler_params=pltpu.CompilerParams(
            dimension_semantics=dims,
            vmem_limit_bytes=int(budget),
        ),
        cost_estimate=cost,
    )(xq, wb, bb)

    if return_logits:
        logits_p, preds_p = result
        return logits_p[:B, :C], preds_p[:B, 0]
    return result[:B, 0]


def autoclassify_forward(x, w, b):
    """Convenience wrapper taking unpadded params; returns (logits, preds)."""
    wb, bb = prepare_params(w, b)
    return autoclassify_apply(x, wb, bb, nclasses=w.shape[-1], return_logits=True)


class AutoClassify:
    """JAX/Pallas stand-in for the abstract PyTorch AutoClassify module."""

    def __init__(self, nclasses, in_features, class_labels=None, key=None):
        self.nclasses = nclasses
        self.class_labels = class_labels
        key = jax.random.PRNGKey(0) if key is None else key
        kw, kb = jax.random.split(key)
        # Deterministic Kaiming-uniform-ish init (like nn.Linear defaults).
        bound = 1.0 / (in_features ** 0.5)
        self.w = jax.random.uniform(
            kw, (in_features, nclasses), jnp.float32, -bound, bound)
        self.b = jax.random.uniform(
            kb, (1, nclasses), jnp.float32, -bound, bound)
        # Padding + bf16 cast hoisted out of the per-call path.
        self.wb, self.bb = prepare_params(self.w, self.b)

    def forward(self, x) -> int:
        # Preds-only fast path: no f32 logits writeback to HBM.
        preds = autoclassify_apply(x, self.wb, self.bb,
                                   nclasses=self.nclasses, return_logits=False)
        preds = jax.block_until_ready(preds)
        # Contract of the reference module: forward(input) -> int.
        return int(preds[0])

    __call__ = forward


if __name__ == "__main__":
    key = jax.random.PRNGKey(0)
    B, D, NCLASSES = 2, 32, 8
    kx, kmod = jax.random.split(key)
    x = jax.random.normal(kx, (B, D), dtype=jnp.float32)

    model = AutoClassify(nclasses=NCLASSES, in_features=D,
                         class_labels=[f"class_{i}" for i in range(NCLASSES)],
                         key=kmod)

    logits, preds = autoclassify_forward(x, model.w, model.b)
    logits = jax.block_until_ready(logits)
    preds = jax.block_until_ready(preds)

    # Cross-check against plain-JAX reference with the same bf16 operand cast
    # (the kernel feeds the MXU bf16 operands with f32 accumulation; this is a
    # documented precision deviation from an f32 PyTorch Linear).
    ref_logits = jnp.dot(x.astype(jnp.bfloat16).astype(jnp.float32),
                         model.w.astype(jnp.bfloat16).astype(jnp.float32)) + model.b
    ref_preds = jnp.argmax(ref_logits, axis=-1).astype(jnp.int32)

    assert logits.shape == (B, NCLASSES)
    assert preds.shape == (B,)
    assert jnp.allclose(logits, ref_logits, atol=1e-3, rtol=1e-3)
    assert jnp.array_equal(preds, ref_preds)

    # Preds-only path (used by the module's forward) must agree as well.
    preds_only = autoclassify_apply(x, model.wb, model.bb,
                                    nclasses=NCLASSES, return_logits=False)
    preds_only = jax.block_until_ready(preds_only)
    assert jnp.array_equal(preds_only, ref_preds)

    pred_class = model(x)   # int, per the module's forward(...) -> int contract
    assert isinstance(pred_class, int)
    assert 0 <= pred_class < NCLASSES

    print("KERNEL_OK")
</pallas_src>

<mosaic_0001>
module attributes {stable_mosaic.version = 11 : i64} {
  func.func @_kernel_w_resident(%arg0: i32, %arg1: memref<16x128xbf16, #tpu.memory_space<vmem>>, %arg2: memref<128x128xbf16, #tpu.memory_space<vmem>>, %arg3: memref<1x128xf32, #tpu.memory_space<vmem>>, %arg4: memref<16x128xf32, #tpu.memory_space<vmem>>, %arg5: memref<16x128xi32, #tpu.memory_space<vmem>>) attributes {dimension_semantics = [#tpu.dimension_semantics<parallel>], iteration_bounds = array<i64: 1>, scalar_prefetch = 0 : i64, scratch_operands = 0 : i64, tpu.core_type = #tpu.core_type<tc>, window_params = [{transform_indices = @transform_0, window_bounds = array<i64: 16, 128>}, {pipeline_mode = #tpu.pipeline_mode<synchronous>, transform_indices = @transform_1, window_bounds = array<i64: 128, 128>}, {pipeline_mode = #tpu.pipeline_mode<synchronous>, transform_indices = @transform_2, window_bounds = array<i64: 1, 128>}, {transform_indices = @transform_3, window_bounds = array<i64: 16, 128>}, {transform_indices = @transform_4, window_bounds = array<i64: 16, 128>}]} {
    %c0 = arith.constant 0 : index
    %c0_0 = arith.constant 0 : index
    %0 = vector.load %arg1[%c0, %c0_0] : memref<16x128xbf16, #tpu.memory_space<vmem>>, vector<16x128xbf16>
    %c0_1 = arith.constant 0 : index
    %c0_2 = arith.constant 0 : index
    %1 = vector.load %arg2[%c0_1, %c0_2] : memref<128x128xbf16, #tpu.memory_space<vmem>>, vector<128x128xbf16>
    %cst = arith.constant dense<0.000000e+00> : vector<16x128xf32>
    %2 = tpu.matmul %0, %1, %cst {dimension_numbers = #tpu.dot_dimension_numbers<[1], [0], [0], [1], [0, 0, 1, 1], [], []>} : vector<16x128xbf16>, vector<128x128xbf16>, vector<16x128xf32> -> vector<16x128xf32>
    %c0_3 = arith.constant 0 : index
    %c0_4 = arith.constant 0 : index
    %3 = vector.load %arg3[%c0_3, %c0_4] : memref<1x128xf32, #tpu.memory_space<vmem>>, vector<1x128xf32>
    %4 = vector.broadcast %3 : vector<1x128xf32> to vector<16x128xf32>
    %5 = arith.addf %2, %4 : vector<16x128xf32>
    %c0_5 = arith.constant 0 : index
    %c0_6 = arith.constant 0 : index
    %6 = vector.load %arg4[%c0_5, %c0_6] : memref<16x128xf32, #tpu.memory_space<vmem>>, vector<16x128xf32>
    tpu.vector_store %arg4[%c0_5, %c0_6], %5 {strides = array<i32>} : memref<16x128xf32, #tpu.memory_space<vmem>>, vector<16x128xf32>,
    %cst_7 = arith.constant dense<0xFF800000> : vector<16xf32>
    %7 = vector.multi_reduction <maximumf>, %5, %cst_7 [1] : vector<16x128xf32> to vector<16xf32>
    %8 = vector.shape_cast %7 : vector<16xf32> to vector<16x1xf32>
    %9 = tpu.iota {dimensions = array<i32: 1>} : vector<16x128xi32>
    %10 = vector.broadcast %8 : vector<16x1xf32> to vector<16x128xf32>
    %11 = arith.cmpf oeq, %5, %10 : vector<16x128xf32>
    %c128_i32 = arith.constant 128 : i32
    %12 = vector.broadcast %c128_i32 : i32 to vector<16x128xi32>
    %13 = arith.select %11, %9, %12 : vector<16x128xi1>, vector<16x128xi32>
    %cst_8 = arith.constant dense<2147483647> : vector<16xi32>
    %14 = vector.multi_reduction <minsi>, %13, %cst_8 [1] : vector<16x128xi32> to vector<16xi32>
    %15 = vector.shape_cast %14 : vector<16xi32> to vector<16x1xi32>
    %16 = vector.shape_cast %15 : vector<16x1xi32> to vector<16x1xi32>
    %17 = vector.broadcast %16 : vector<16x1xi32> to vector<16x128xi32>
    %c0_9 = arith.constant 0 : index
    %c0_10 = arith.constant 0 : index
    %18 = vector.load %arg5[%c0_9, %c0_10] : memref<16x128xi32, #tpu.memory_space<vmem>>, vector<16x128xi32>
    tpu.vector_store %arg5[%c0_9, %c0_10], %17 {strides = array<i32>} : memref<16x128xi32, #tpu.memory_space<vmem>>, vector<16x128xi32>,
    return
  }
  func.func @transform_0(%arg0: i32) -> (i32, i32) {
    %c0_i32 = arith.constant 0 : i32
    %c0_i32_0 = arith.constant 0 : i32
    return %arg0, %c0_i32 : i32, i32
  }
  func.func @transform_1(%arg0: i32) -> (i32, i32) {
    %c0_i32 = arith.constant 0 : i32
    %c0_i32_0 = arith.constant 0 : i32
    %c0_i32_1 = arith.constant 0 : i32
    return %c0_i32, %c0_i32_0 : i32, i32
  }
  func.func @transform_2(%arg0: i32) -> (i32, i32) {
    %c0_i32 = arith.constant 0 : i32
    %c0_i32_0 = arith.constant 0 : i32
    %c0_i32_1 = arith.constant 0 : i32
    return %c0_i32, %c0_i32_0 : i32, i32
  }
  func.func @transform_3(%arg0: i32) -> (i32, i32) {
    %c0_i32 = arith.constant 0 : i32
    %c0_i32_0 = arith.constant 0 : i32
    return %arg0, %c0_i32 : i32, i32
  }
  func.func @transform_4(%arg0: i32) -> (i32, i32) {
    %c0_i32 = arith.constant 0 : i32
    %c0_i32_0 = arith.constant 0 : i32
    return %arg0, %c0_i32 : i32, i32
  }
}

</mosaic_0001>

<bundles_post_ra>
// kernel: autoclassify_apply.1
= control target key start
LH: loop header
LB: loop body
LE: loop exit
PB: predicated region body
PF: predicated region fallthrough
CT: control target
= control target key end

     0   :  { %10 = vsyncpa [#allocation3], 0  ;;  %s279_s15 = smov [#allocation2]   ;;  %s339_s0 = inlined_call_operand.vmem [shape: bf16[16,128], index: 0, kind: input, shape index: {}]   ;;  %s340_s1 = inlined_call_operand.hbm [shape: bf16[128,128], index: 1, kind: input, shape index: {}]   ;;  %s341_s2 = inlined_call_operand.vmem [shape: f32[1,128], index: 2, kind: input, shape index: {}]   ;;  %s342_s3 = inlined_call_operand.vmem [shape: f32[16,128], index: 3, kind: output, shape index: {0}]   ;;  %s343_s4 = inlined_call_operand.vmem [shape: s32[16,128], index: 4, kind: output, shape index: {1}]  }
   0x1   :  { %s18_s16 = sshll.u32 %s279_s15, 4  ;;  %s255_s19 = scalar_lea.hbm %s340_s1, 1024  ;;  %s19_s16 = int_to_ptr.vmem [resolvable:$true] %s18_s16 }
   0x2   :  { %p256_p0 = scmp.ne.s32.totalorder %s340_s1, %s255_s19  ;;  %p259_p1 = scmp.lt.u32.totalorder %s255_s19, %s340_s1 }
   0x4   :  { %p261_p2 = pnand %p259_p1, %p256_p0 }
   0x6   :  { %264 = shalt.err (!%p261_p2)
}
   0x7   :  { %s265_s24 = scalar_lea.vmem %s19_s16, 1024  ;;  %p270_p4 = scmp.lt.s32.totalorder %s19_s16, %s19_s16 }
   0x8   :  { %p266_p3 = scmp.ne.s32.totalorder %s19_s16, %s265_s24  ;;  %p271_p5 = scmp.lt.s32.totalorder %s265_s24, %s265_s24 }
   0xa   :  { %p272_p6 = por %p271_p5, %p270_p4 }
   0xc   :  { %p273_p7 = pnand %p272_p6, %p266_p3 }
   0xe   :  { %276 = shalt.err (!%p273_p7)
}
   0xf   :  { %s280_s25 = smov 64   ;;  %s281_s26 = smov 4  }
  0x10   :  { %24 = dma.hbm_to_vmem [thread:$0]  %s340_s1, 1024, %s19_s16, [#allocation3], %s280_s25, %s280_s25, %s281_s26  }
  0x11   :  { %277 = dma.done.wait [#allocation3], 1024  }
  0x12   :  { %278 = vsyncadd [#allocation3], 4294966272  ;;  %v282_v0 = vmov 0.0   ;;  %vm283_vm0 = vmmov 0   ;;  %v246_v1 = vld [vmem:[#allocation2] sm:$0xff]   ;;  %v247_v2 = vld [vmem:[#allocation2 + $0x8] sm:$0xff]   ;;  %v157_v17 = vlaneseq }
  0x13   :  { %221 = vmatprep.subr.bf16.mxu0 %v282_v0  ;;  %237 = vmatprep.mubr.msk.bf16.mxu0 %vm283_vm0, %v282_v0  ;;  %v248_v3 = vld [vmem:[#allocation2 + $0x10] sm:$0xff]   ;;  %v249_v4 = vld [vmem:[#allocation2 + $0x18] sm:$0xff]   ;;  %v250_v5 = vld [vmem:[#allocation2 + $0x20] sm:$0xff]  }
  0x14   :  { %222 = vmatpush3.bf16.msra.mxu0 %v246_v1  ;;  %v251_v6 = vld [vmem:[#allocation2 + $0x28] sm:$0xff]   ;;  %v252_v7 = vld [vmem:[#allocation2 + $0x30] sm:$0xff]   ;;  %v253_v8 = vld [vmem:[#allocation2 + $0x38] sm:$0xff]   ;;  %v158_v18 = vand.u32 127, %v157_v17 }
  0x15   :  { %223 = vmatprep.subr.bf16.mxu0 %v282_v0  ;;  %v254_v9 = vld [vmem:[%s339_s0] sm:$0xff]  }
  0x16   :  { %v202_v10 = vld [vmem:[%s341_s2] ss:$0 sm:$0xff] }
  0x18   :  { %224 = vmatpush3.bf16.msra.mxu0 %v247_v2 }
  0x19   :  { %225 = vmatprep.subr.bf16.mxu0 %v282_v0 }
  0x1c   :  { %226 = vmatpush3.bf16.msra.mxu0 %v248_v3 }
  0x1d   :  { %227 = vmatprep.subr.bf16.mxu0 %v282_v0 }
  0x20   :  { %228 = vmatpush3.bf16.msra.mxu0 %v249_v4 }
  0x21   :  { %229 = vmatprep.subr.bf16.mxu0 %v282_v0 }
  0x24   :  { %230 = vmatpush3.bf16.msra.mxu0 %v250_v5 }
  0x25   :  { %231 = vmatprep.subr.bf16.mxu0 %v282_v0 }
  0x28   :  { %232 = vmatpush3.bf16.msra.mxu0 %v251_v6 }
  0x29   :  { %233 = vmatprep.subr.bf16.mxu0 %v282_v0 }
  0x2c   :  { %234 = vmatpush3.bf16.msra.mxu0 %v252_v7 }
  0x2d   :  { %235 = vmatprep.subr.bf16.mxu0 %v282_v0 }
  0x30   :  { %236 = vmatpush3.bf16.msra.mxu0 %v253_v8 }
  0x33   :  { %238 = vmatmul.mubr.bf16.vlgmr.msra.gmra.mrb[0].mxu0 %v254_v9 }
 0x106   :  { %v144_v11 = vpop.f32.mrb[0].mxu0 }
 0x107   :  { %v145_v12 = vadd.f32 %v202_v10, %v144_v11  ;;  %v239_v13 = vpop.f32.mrb[1].mxu0 }
 0x108   :  { %v147_v14 = vpop.f32.mrb[2].mxu0 }
 0x109   :  { %151 = vst [vmem:[%s342_s3] sm:$0xff] %v145_v12  ;;  %v148_v15 = vadd.f32 %v202_v10, %v147_v14  ;;  %153 = vmax.xlane.f32.xlu0 %v145_v12  ;;  %v240_v16 = vpop.f32.mrb[3].mxu0 }
 0x10b   :  { %152 = vst [vmem:[%s342_s3 + $0x8] sm:$0xff] %v148_v15 }
 0x10d   :  { %155 = vmax.xlane.f32.xlu0 %v148_v15 }
 0x196   :  { %v154_v19 = vpop.xlane.xlu0 %153 }
 0x197   :  { %vm159_vm1 = vcmp.eq.f32.partialorder %v145_v12, %v154_v19 }
 0x198   :  { %v161_v20 = vsel %vm159_vm1, %v158_v18, 128 }
 0x199   :  { %v164_v21 = vshra.s32 %v161_v20, 16  ;;  %v163_v27 = vand.u32 65535, %v161_v20 }
 0x19a   :  { %v156_v22 = vpop.xlane.xlu0 %155 }
 0x19b   :  { %vm160_vm2 = vcmp.eq.f32.partialorder %v148_v15, %v156_v22  ;;  %v166_v23 = vcvt.s32.f32 %v164_v21  ;;  %v165_v30 = vcvt.s32.f32 %v163_v27 }
 0x19c   :  { %v162_v24 = vsel %vm160_vm2, %v158_v18, 128 }
 0x19d   :  { %167 = vmin.xlane.f32.xlu1 %v166_v23  ;;  %v178_v25 = vshra.s32 %v162_v24, 16  ;;  %v177_v28 = vand.u32 65535, %v162_v24 }
 0x19f   :  { %v180_v26 = vcvt.s32.f32 %v178_v25  ;;  %v179_v33 = vcvt.s32.f32 %v177_v28 }
 0x1a1   :  { %181 = vmin.xlane.f32.xlu1 %v180_v26 }
 0x22a   :  { %v168_v29 = vpop.xlane.xlu1 %167 }
 0x22b   :  { %vm169_vm3 = vcmp.eq.f32.partialorder %v166_v23, %v168_v29  ;;  %v174_v35 = vcvt.f32.s32 %v168_v29 }
 0x22c   :  { %v170_v31 = vsel %vm169_vm3, %v165_v30, inf }
 0x22d   :  { %171 = vmin.xlane.f32.xlu0 %v170_v31  ;;  %v175_v37 = vshll.u32 %v174_v35, 16 }
 0x22e   :  { %v182_v32 = vpop.xlane.xlu1 %181 }
 0x22f   :  { %vm183_vm4 = vcmp.eq.f32.partialorder %v180_v26, %v182_v32  ;;  %v188_v38 = vcvt.f32.s32 %v182_v32 }
 0x230   :  { %v184_v34 = vsel %vm183_vm4, %v179_v33, inf }
 0x231   :  { %185 = vmin.xlane.f32.xlu1 %v184_v34  ;;  %v189_v42 = vshll.u32 %v188_v38, 16 }
 0x2ba   :  { %v172_v36 = vpop.xlane.xlu0 %171 }
 0x2bb   :  { %v173_v39 = vcvt.f32.s32 %v172_v36 }
 0x2bd   :  { %v176_v40 = vadd.s32 %v175_v37, %v173_v39 }
 0x2be   :  { %v186_v41 = vpop.xlane.xlu1 %185 }
 0x2bf   :  { %191 = vst [vmem:[%s343_s4] sm:$0xff] %v176_v40  ;;  %v187_v43 = vcvt.f32.s32 %v186_v41 }
 0x2c1   :  { %v190_v44 = vadd.s32 %v189_v42, %v187_v43 }
 0x2c3   :  { %192 = vst [vmem:[%s343_s4 + $0x8] sm:$0xff] %v190_v44 }
 0x2c4   :  { %201 = vsyncpa [#allocation3], 1 }

</bundles_post_ra>
